<compile_context>
chip_gen: v7x
topology: tpu7x:2x2x1
jax: 0.10.0
libtpu: 0.0.40
codegen_flags: <defaults>
</compile_context>

<pallas_src>
import functools

import jax
import jax.numpy as jnp
from jax.experimental import pallas as pl
from jax.experimental.pallas import tpu as pltpu

INPUT_SIZE = 28 * 28      # 784
HIDDEN_SIZE = 500
NUM_CLASSES = 10

HIDDEN_PAD = 512          # next multiple of 128
OUT_PAD = 128             # lane-dense output slab
DEFAULT_BLOCK_B = 256     # batch tile (multiple of 8), VMEM-safe on v7x


def _round_up(x, m):
    return ((x + m - 1) // m) * m


def mlp_kernel(x_ref, w1_ref, b1_ref, w2_ref, b2_ref, o_ref):
    # fc1: [TB, 784](bf16) @ [784, 512](bf16) -> f32 accumulate on the MXU.
    x_bf = x_ref[...].astype(jnp.bfloat16)
    h = jnp.dot(x_bf, w1_ref[...], preferred_element_type=jnp.float32)
    # Bias add + ReLU in f32 on the VPU (v5e has no bf16 VPU path).
    h = jnp.maximum(h + b1_ref[...], 0.0)
    # fc2: [TB, 512](bf16) @ [512, 128](bf16) -> f32 accumulate.
    out = jnp.dot(h.astype(jnp.bfloat16), w2_ref[...],
                  preferred_element_type=jnp.float32)
    # Lane-dense (TB, 128) f32 store — no masked vst.
    o_ref[...] = (out + b2_ref[...]).astype(o_ref.dtype)


@functools.partial(jax.jit, static_argnames=("block_b",))
def neural_network_forward(x, w1, b1, w2, b2, *, block_b=DEFAULT_BLOCK_B):
    """x: [B, INPUT_SIZE] f32; w1: [784,500]; b1: [500]; w2: [500,10]; b2: [10].

    Returns logits [B, NUM_CLASSES] f32 (same semantics as the PyTorch module,
    computed with bf16 MXU inputs and f32 accumulation).
    """
    B = x.shape[0]

    # --- pad hidden/output dims to dense lane multiples (zeros => identical math)
    w1_p = jnp.pad(w1, ((0, 0), (0, HIDDEN_PAD - HIDDEN_SIZE))).astype(jnp.bfloat16)
    b1_p = jnp.pad(b1, (0, HIDDEN_PAD - HIDDEN_SIZE)).reshape(1, HIDDEN_PAD)
    w2_p = jnp.pad(w2, ((0, HIDDEN_PAD - HIDDEN_SIZE),
                        (0, OUT_PAD - NUM_CLASSES))).astype(jnp.bfloat16)
    b2_p = jnp.pad(b2, (0, OUT_PAD - NUM_CLASSES)).reshape(1, OUT_PAD)

    # --- batch tiling: pad B up to a multiple of the batch tile
    tb = min(block_b, _round_up(B, 8))
    b_pad = _round_up(B, tb)
    if b_pad != B:
        x = jnp.pad(x, ((0, b_pad - B), (0, 0)))
    grid = (b_pad // tb,)

    flops = 2 * b_pad * (INPUT_SIZE * HIDDEN_PAD + HIDDEN_PAD * OUT_PAD)
    bytes_accessed = (x.size * 4 + w1_p.size * 2 + w2_p.size * 2
                      + b1_p.size * 4 + b2_p.size * 4 + b_pad * OUT_PAD * 4)

    out_padded = pl.pallas_call(
        mlp_kernel,
        out_shape=jax.ShapeDtypeStruct((b_pad, OUT_PAD), jnp.float32),
        grid=grid,
        in_specs=[
            pl.BlockSpec((tb, INPUT_SIZE), lambda i: (i, 0)),          # x tile
            pl.BlockSpec((INPUT_SIZE, HIDDEN_PAD), lambda i: (0, 0)),  # w1 (resident)
            pl.BlockSpec((1, HIDDEN_PAD), lambda i: (0, 0)),           # b1 (resident)
            pl.BlockSpec((HIDDEN_PAD, OUT_PAD), lambda i: (0, 0)),     # w2 (resident)
            pl.BlockSpec((1, OUT_PAD), lambda i: (0, 0)),              # b2 (resident)
        ],
        out_specs=pl.BlockSpec((tb, OUT_PAD), lambda i: (i, 0)),
        compiler_params=pltpu.CompilerParams(
            dimension_semantics=("parallel",)),                        # v7x: 2 TCs
        cost_estimate=pl.CostEstimate(
            flops=flops, transcendentals=0, bytes_accessed=bytes_accessed),
    )(x, w1_p, b1_p, w2_p, b2_p)

    # Strip batch / class padding.
    return out_padded[:B, :NUM_CLASSES]


def init_params(key):
    """Deterministic PyTorch-Linear-style init (uniform +/- 1/sqrt(fan_in)).

    Weights stored [in_features, out_features] (transposed vs PyTorch's
    [out, in]) so the kernel computes x @ W + b directly.
    """
    k1, k2, k3, k4 = jax.random.split(key, 4)
    bound1 = 1.0 / (INPUT_SIZE ** 0.5)
    bound2 = 1.0 / (HIDDEN_SIZE ** 0.5)
    w1 = jax.random.uniform(k1, (INPUT_SIZE, HIDDEN_SIZE), jnp.float32,
                            minval=-bound1, maxval=bound1)
    b1 = jax.random.uniform(k2, (HIDDEN_SIZE,), jnp.float32,
                            minval=-bound1, maxval=bound1)
    w2 = jax.random.uniform(k3, (HIDDEN_SIZE, NUM_CLASSES), jnp.float32,
                            minval=-bound2, maxval=bound2)
    b2 = jax.random.uniform(k4, (NUM_CLASSES,), jnp.float32,
                            minval=-bound2, maxval=bound2)
    return w1, b1, w2, b2


if __name__ == "__main__":
    key = jax.random.PRNGKey(0)
    kx, kp = jax.random.split(key)

    batch = 8
    x = jax.random.normal(kx, (batch, INPUT_SIZE), jnp.float32)
    w1, b1, w2, b2 = init_params(kp)

    logits = neural_network_forward(x, w1, b1, w2, b2)
    logits = jax.block_until_ready(logits)
    assert logits.shape == (batch, NUM_CLASSES)

    # Pure-JAX reference emulating the kernel's numerics (bf16 inputs to the
    # matmuls, f32 accumulation) — should match closely.
    w1_bf = w1.astype(jnp.bfloat16).astype(jnp.float32)
    w2_bf = w2.astype(jnp.bfloat16).astype(jnp.float32)
    x_bf = x.astype(jnp.bfloat16).astype(jnp.float32)
    h_ref = jnp.maximum(x_bf @ w1_bf + b1, 0.0)
    ref = h_ref.astype(jnp.bfloat16).astype(jnp.float32) @ w2_bf + b2
    assert jnp.allclose(logits, ref, atol=1e-2, rtol=1e-2), (
        float(jnp.max(jnp.abs(logits - ref))))

    # Also sanity-check against the pure-f32 reference with a looser tolerance.
    ref_f32 = jnp.maximum(x @ w1 + b1, 0.0) @ w2 + b2
    assert jnp.allclose(logits, ref_f32, atol=5e-2, rtol=5e-2)

    print("KERNEL_OK")
</pallas_src>

<mosaic_0001>
module attributes {stable_mosaic.version = 11 : i64} {
  func.func @mlp_kernel(%arg0: i32, %arg1: memref<8x784xf32, #tpu.memory_space<vmem>>, %arg2: memref<784x512xbf16, #tpu.memory_space<vmem>>, %arg3: memref<1x512xf32, #tpu.memory_space<vmem>>, %arg4: memref<512x128xbf16, #tpu.memory_space<vmem>>, %arg5: memref<1x128xf32, #tpu.memory_space<vmem>>, %arg6: memref<8x128xf32, #tpu.memory_space<vmem>>) attributes {dimension_semantics = [#tpu.dimension_semantics<parallel>], iteration_bounds = array<i64: 1>, scalar_prefetch = 0 : i64, scratch_operands = 0 : i64, tpu.core_type = #tpu.core_type<tc>, window_params = [{transform_indices = @transform_0, window_bounds = array<i64: 8, 784>}, {pipeline_mode = #tpu.pipeline_mode<synchronous>, transform_indices = @transform_1, window_bounds = array<i64: 784, 512>}, {pipeline_mode = #tpu.pipeline_mode<synchronous>, transform_indices = @transform_2, window_bounds = array<i64: 1, 512>}, {pipeline_mode = #tpu.pipeline_mode<synchronous>, transform_indices = @transform_3, window_bounds = array<i64: 512, 128>}, {pipeline_mode = #tpu.pipeline_mode<synchronous>, transform_indices = @transform_4, window_bounds = array<i64: 1, 128>}, {transform_indices = @transform_5, window_bounds = array<i64: 8, 128>}]} {
    %c0 = arith.constant 0 : index
    %c0_0 = arith.constant 0 : index
    %0 = vector.load %arg1[%c0, %c0_0] : memref<8x784xf32, #tpu.memory_space<vmem>>, vector<8x784xf32>
    %1 = arith.truncf %0 : vector<8x784xf32> to vector<8x784xbf16>
    %c0_1 = arith.constant 0 : index
    %c0_2 = arith.constant 0 : index
    %2 = vector.load %arg2[%c0_1, %c0_2] : memref<784x512xbf16, #tpu.memory_space<vmem>>, vector<784x512xbf16>
    %cst = arith.constant dense<0.000000e+00> : vector<8x512xf32>
    %3 = tpu.matmul %1, %2, %cst {dimension_numbers = #tpu.dot_dimension_numbers<[1], [0], [0], [1], [0, 0, 1, 1], [], []>} : vector<8x784xbf16>, vector<784x512xbf16>, vector<8x512xf32> -> vector<8x512xf32>
    %c0_3 = arith.constant 0 : index
    %c0_4 = arith.constant 0 : index
    %4 = vector.load %arg3[%c0_3, %c0_4] : memref<1x512xf32, #tpu.memory_space<vmem>>, vector<1x512xf32>
    %5 = vector.broadcast %4 : vector<1x512xf32> to vector<8x512xf32>
    %6 = arith.addf %3, %5 : vector<8x512xf32>
    %cst_5 = arith.constant 0.000000e+00 : f32
    %7 = vector.broadcast %cst_5 : f32 to vector<8x512xf32>
    %8 = arith.maximumf %6, %7 : vector<8x512xf32>
    %9 = arith.truncf %8 : vector<8x512xf32> to vector<8x512xbf16>
    %c0_6 = arith.constant 0 : index
    %c0_7 = arith.constant 0 : index
    %10 = vector.load %arg4[%c0_6, %c0_7] : memref<512x128xbf16, #tpu.memory_space<vmem>>, vector<512x128xbf16>
    %cst_8 = arith.constant dense<0.000000e+00> : vector<8x128xf32>
    %11 = tpu.matmul %9, %10, %cst_8 {dimension_numbers = #tpu.dot_dimension_numbers<[1], [0], [0], [1], [0, 0, 1, 1], [], []>} : vector<8x512xbf16>, vector<512x128xbf16>, vector<8x128xf32> -> vector<8x128xf32>
    %c0_9 = arith.constant 0 : index
    %c0_10 = arith.constant 0 : index
    %12 = vector.load %arg5[%c0_9, %c0_10] : memref<1x128xf32, #tpu.memory_space<vmem>>, vector<1x128xf32>
    %13 = vector.broadcast %12 : vector<1x128xf32> to vector<8x128xf32>
    %14 = arith.addf %11, %13 : vector<8x128xf32>
    %c0_11 = arith.constant 0 : index
    %c0_12 = arith.constant 0 : index
    %15 = vector.load %arg6[%c0_11, %c0_12] : memref<8x128xf32, #tpu.memory_space<vmem>>, vector<8x128xf32>
    tpu.vector_store %arg6[%c0_11, %c0_12], %14 {strides = array<i32>} : memref<8x128xf32, #tpu.memory_space<vmem>>, vector<8x128xf32>,
    return
  }
  func.func @transform_0(%arg0: i32) -> (i32, i32) {
    %c0_i32 = arith.constant 0 : i32
    %c0_i32_0 = arith.constant 0 : i32
    return %arg0, %c0_i32 : i32, i32
  }
  func.func @transform_1(%arg0: i32) -> (i32, i32) {
    %c0_i32 = arith.constant 0 : i32
    %c0_i32_0 = arith.constant 0 : i32
    %c0_i32_1 = arith.constant 0 : i32
    return %c0_i32, %c0_i32_0 : i32, i32
  }
  func.func @transform_2(%arg0: i32) -> (i32, i32) {
    %c0_i32 = arith.constant 0 : i32
    %c0_i32_0 = arith.constant 0 : i32
    %c0_i32_1 = arith.constant 0 : i32
    return %c0_i32, %c0_i32_0 : i32, i32
  }
  func.func @transform_3(%arg0: i32) -> (i32, i32) {
    %c0_i32 = arith.constant 0 : i32
    %c0_i32_0 = arith.constant 0 : i32
    %c0_i32_1 = arith.constant 0 : i32
    return %c0_i32, %c0_i32_0 : i32, i32
  }
  func.func @transform_4(%arg0: i32) -> (i32, i32) {
    %c0_i32 = arith.constant 0 : i32
    %c0_i32_0 = arith.constant 0 : i32
    %c0_i32_1 = arith.constant 0 : i32
    return %c0_i32, %c0_i32_0 : i32, i32
  }
  func.func @transform_5(%arg0: i32) -> (i32, i32) {
    %c0_i32 = arith.constant 0 : i32
    %c0_i32_0 = arith.constant 0 : i32
    return %arg0, %c0_i32 : i32, i32
  }
}

</mosaic_0001>

<bundles_post_ra>
// kernel: neural_network_forward.1
= control target key start
LH: loop header
LB: loop body
LE: loop exit
PB: predicated region body
PF: predicated region fallthrough
CT: control target
= control target key end

     0   :  { %s3342_s0 = inlined_call_operand.vmem [shape: f32[8,784], index: 0, kind: input, shape index: {}]   ;;  %s3343_s1 = inlined_call_operand.vmem [shape: bf16[784,512], index: 1, kind: input, shape index: {}]   ;;  %s3344_s2 = inlined_call_operand.vmem [shape: f32[1,512], index: 2, kind: input, shape index: {}]   ;;  %s3345_s3 = inlined_call_operand.vmem [shape: bf16[512,128], index: 3, kind: input, shape index: {}]   ;;  %s3346_s4 = inlined_call_operand.vmem [shape: f32[1,128], index: 4, kind: input, shape index: {}]   ;;  %s3347_s5 = inlined_call_operand.hbm [shape: f32[8,128], index: 5, kind: output, shape index: {}]  }
   0x1   :  { %v2237_v0 = vld [vmem:[%s3343_s1 + $0x4] ss:$16 sps:$4 sm:$0xff]   ;;  %v2239_v1 = vld [vmem:[%s3343_s1 + $0xc] ss:$16 sps:$4 sm:$0xff]   ;;  %v2241_v2 = vld [vmem:[%s3343_s1] ss:$16 sps:$4 sm:$0xff]  }
   0x2   :  { %1238 = vmatprep.subr.bf16.mxu0 %v2237_v0  ;;  %v2242_v3 = vld [vmem:[%s3343_s1 + $0x8] ss:$16 sps:$4 sm:$0xff]   ;;  %1402 = vmatprep.subr.bf16.mxu1 %v2239_v1  ;;  %v2243_v4 = vld [vmem:[%s3343_s1 + $0x24] ss:$16 sps:$4 sm:$0xff]   ;;  %v2245_v5 = vld [vmem:[%s3343_s1 + $0x2c] ss:$16 sps:$4 sm:$0xff]  }
   0x3   :  { %1239 = vmatpush1.bf16.msra.mxu0 %v2241_v2  ;;  %1403 = vmatpush1.bf16.msra.mxu1 %v2242_v3  ;;  %v2247_v6 = vld [vmem:[%s3343_s1 + $0x20] ss:$16 sps:$4 sm:$0xff]   ;;  %v2248_v7 = vld [vmem:[%s3343_s1 + $0x28] ss:$16 sps:$4 sm:$0xff]   ;;  %v2249_v8 = vld [vmem:[%s3343_s1 + $0x44] ss:$16 sps:$4 sm:$0xff]  }
   0x4   :  { %1240 = vmatprep.subr.bf16.mxu0 %v2243_v4  ;;  %1404 = vmatprep.subr.bf16.mxu1 %v2245_v5  ;;  %v2251_v9 = vld [vmem:[%s3343_s1 + $0x4c] ss:$16 sps:$4 sm:$0xff]   ;;  %v2253_v10 = vld [vmem:[%s3343_s1 + $0x40] ss:$16 sps:$4 sm:$0xff]   ;;  %v2254_v11 = vld [vmem:[%s3343_s1 + $0x48] ss:$16 sps:$4 sm:$0xff]  }
   0x5   :  { %v2255_v12 = vld [vmem:[%s3343_s1 + $0x64] ss:$16 sps:$4 sm:$0xff]   ;;  %v2257_v13 = vld [vmem:[%s3343_s1 + $0x6c] ss:$16 sps:$4 sm:$0xff]   ;;  %v2259_v14 = vld [vmem:[%s3343_s1 + $0x60] ss:$16 sps:$4 sm:$0xff]  }
   0x6   :  { %v2260_v15 = vld [vmem:[%s3343_s1 + $0x68] ss:$16 sps:$4 sm:$0xff]   ;;  %v2261_v16 = vld [vmem:[%s3343_s1 + $0x84] ss:$16 sps:$4 sm:$0xff]   ;;  %v2263_v17 = vld [vmem:[%s3343_s1 + $0x8c] ss:$16 sps:$4 sm:$0xff]  }
   0x7   :  { %1241 = vmatpush1.bf16.msra.mxu0 %v2247_v6  ;;  %1405 = vmatpush1.bf16.msra.mxu1 %v2248_v7  ;;  %v2265_v18 = vld [vmem:[%s3343_s1 + $0x80] ss:$16 sps:$4 sm:$0xff]   ;;  %v2266_v19 = vld [vmem:[%s3343_s1 + $0x88] ss:$16 sps:$4 sm:$0xff]   ;;  %v2267_v20 = vld [vmem:[%s3343_s1 + $0xa4] ss:$16 sps:$4 sm:$0xff]  }
   0x8   :  { %1242 = vmatprep.subr.bf16.mxu0 %v2249_v8  ;;  %1406 = vmatprep.subr.bf16.mxu1 %v2251_v9  ;;  %v2269_v21 = vld [vmem:[%s3343_s1 + $0xac] ss:$16 sps:$4 sm:$0xff]   ;;  %v2271_v22 = vld [vmem:[%s3343_s1 + $0xa0] ss:$16 sps:$4 sm:$0xff]   ;;  %v2272_v23 = vld [vmem:[%s3343_s1 + $0xa8] ss:$16 sps:$4 sm:$0xff]  }
   0x9   :  { %v2273_v24 = vld [vmem:[%s3343_s1 + $0xc4] ss:$16 sps:$4 sm:$0xff]   ;;  %v2275_v25 = vld [vmem:[%s3343_s1 + $0xcc] ss:$16 sps:$4 sm:$0xff]   ;;  %v2277_v26 = vld [vmem:[%s3343_s1 + $0xc0] ss:$16 sps:$4 sm:$0xff]  }
   0xa   :  { %v2278_v27 = vld [vmem:[%s3343_s1 + $0xc8] ss:$16 sps:$4 sm:$0xff]   ;;  %v2279_v28 = vld [vmem:[%s3343_s1 + $0xe4] ss:$16 sps:$4 sm:$0xff]   ;;  %v2281_v29 = vld [vmem:[%s3343_s1 + $0xec] ss:$16 sps:$4 sm:$0xff]  }
   0xb   :  { %1243 = vmatpush1.bf16.msra.mxu0 %v2253_v10  ;;  %1407 = vmatpush1.bf16.msra.mxu1 %v2254_v11  ;;  %v2283_v30 = vld [vmem:[%s3343_s1 + $0xe0] ss:$16 sps:$4 sm:$0xff]   ;;  %v2284_v31 = vld [vmem:[%s3343_s1 + $0xe8] ss:$16 sps:$4 sm:$0xff]   ;;  %v2285_v32 = vld [vmem:[%s3343_s1 + $0x104] ss:$16 sps:$4 sm:$0xff]  }
   0xc   :  { %1244 = vmatprep.subr.bf16.mxu0 %v2255_v12  ;;  %1408 = vmatprep.subr.bf16.mxu1 %v2257_v13  ;;  %v2287_v33 = vld [vmem:[%s3343_s1 + $0x10c] ss:$16 sps:$4 sm:$0xff]   ;;  %v2289_v34 = vld [vmem:[%s3343_s1 + $0x100] ss:$16 sps:$4 sm:$0xff]   ;;  %v2290_v35 = vld [vmem:[%s3343_s1 + $0x108] ss:$16 sps:$4 sm:$0xff]  }
   0xd   :  { %v2291_v36 = vld [vmem:[%s3343_s1 + $0x124] ss:$16 sps:$4 sm:$0xff]   ;;  %v2293_v37 = vld [vmem:[%s3343_s1 + $0x12c] ss:$16 sps:$4 sm:$0xff]   ;;  %v2295_v38 = vld [vmem:[%s3343_s1 + $0x120] ss:$16 sps:$4 sm:$0xff]  }
   0xe   :  { %v2296_v39 = vld [vmem:[%s3343_s1 + $0x128] ss:$16 sps:$4 sm:$0xff]   ;;  %v2297_v40 = vld [vmem:[%s3343_s1 + $0x144] ss:$16 sps:$4 sm:$0xff]   ;;  %v2299_v41 = vld [vmem:[%s3343_s1 + $0x14c] ss:$16 sps:$4 sm:$0xff]  }
   0xf   :  { %1245 = vmatpush1.bf16.msra.mxu0 %v2259_v14  ;;  %1409 = vmatpush1.bf16.msra.mxu1 %v2260_v15  ;;  %v2301_v42 = vld [vmem:[%s3343_s1 + $0x140] ss:$16 sps:$4 sm:$0xff]   ;;  %v2302_v43 = vld [vmem:[%s3343_s1 + $0x148] ss:$16 sps:$4 sm:$0xff]   ;;  %v2303_v44 = vld [vmem:[%s3343_s1 + $0x164] ss:$16 sps:$4 sm:$0xff]  }
  0x10   :  { %1246 = vmatprep.subr.bf16.mxu0 %v2261_v16  ;;  %1410 = vmatprep.subr.bf16.mxu1 %v2263_v17  ;;  %v2305_v45 = vld [vmem:[%s3343_s1 + $0x16c] ss:$16 sps:$4 sm:$0xff]   ;;  %v2307_v47 = vld [vmem:[%s3343_s1 + $0x160] ss:$16 sps:$4 sm:$0xff]   ;;  %v2308_v49 = vld [vmem:[%s3343_s1 + $0x168] ss:$16 sps:$4 sm:$0xff]  }
  0x11   :  { %v23_v46 = vld [vmem:[%s3342_s0 + $0x8] sm:$0xff]  ;;  %v2309_v50 = vld [vmem:[%s3343_s1 + $0x184] ss:$16 sps:$4 sm:$0xff]   ;;  %v2313_v52 = vld [vmem:[%s3343_s1 + $0x180] ss:$16 sps:$4 sm:$0xff]  }
  0x12   :  { %v30_v48 = vpack.c.bf16 %v23_v46, %v23_v46  ;;  %v2311_v51 = vld [vmem:[%s3343_s1 + $0x18c] ss:$16 sps:$4 sm:$0xff]   ;;  %v2314_v53 = vld [vmem:[%s3343_s1 + $0x188] ss:$16 sps:$4 sm:$0xff]   ;;  %v2315_v54 = vld [vmem:[%s3343_s1 + $0x1a4] ss:$16 sps:$4 sm:$0xff]  }
  0x13   :  { %1247 = vmatpush1.bf16.msra.mxu0 %v2265_v18  ;;  %1411 = vmatpush1.bf16.msra.mxu1 %v2266_v19  ;;  %v2317_v55 = vld [vmem:[%s3343_s1 + $0x1ac] ss:$16 sps:$4 sm:$0xff]   ;;  %v2319_v56 = vld [vmem:[%s3343_s1 + $0x1a0] ss:$16 sps:$4 sm:$0xff]   ;;  %v2320_v57 = vld [vmem:[%s3343_s1 + $0x1a8] ss:$16 sps:$4 sm:$0xff]  }
  0x14   :  { %1248 = vmatprep.subr.bf16.mxu0 %v2267_v20  ;;  %1412 = vmatprep.subr.bf16.mxu1 %v2269_v21  ;;  %v2321_v58 = vld [vmem:[%s3343_s1 + $0x1c4] ss:$16 sps:$4 sm:$0xff]   ;;  %v2323_v59 = vld [vmem:[%s3343_s1 + $0x1cc] ss:$16 sps:$4 sm:$0xff]   ;;  %v2325_v60 = vld [vmem:[%s3343_s1 + $0x1c0] ss:$16 sps:$4 sm:$0xff]  }
  0x15   :  { %1270 = vmatprep.mubr.bf16.mxu0 %v30_v48  ;;  %1434 = vmatprep.mubr.bf16.mxu1 %v30_v48  ;;  %v2326_v61 = vld [vmem:[%s3343_s1 + $0x1c8] ss:$16 sps:$4 sm:$0xff]   ;;  %v2327_v62 = vld [vmem:[%s3343_s1 + $0x1e4] ss:$16 sps:$4 sm:$0xff]   ;;  %v2329_v63 = vld [vmem:[%s3343_s1 + $0x1ec] ss:$16 sps:$4 sm:$0xff]  }
  0x16   :  { %v2331_v0 = vld [vmem:[%s3343_s1 + $0x1e0] ss:$16 sps:$4 sm:$0xff]   ;;  %v2332_v1 = vld [vmem:[%s3343_s1 + $0x1e8] ss:$16 sps:$4 sm:$0xff]   ;;  %v2335_v3 = vld [vmem:[%s3343_s1 + $0x204] ss:$16 sps:$4 sm:$0xff]  }
  0x17   :  { %1249 = vmatpush1.bf16.msra.mxu0 %v2271_v22  ;;  %1413 = vmatpush1.bf16.msra.mxu1 %v2272_v23  ;;  %v22_v2 = vld [vmem:[%s3342_s0] sm:$0xff]  ;;  %v2338_v4 = vld [vmem:[%s3343_s1 + $0x20c] ss:$16 sps:$4 sm:$0xff]   ;;  %v2336_v7 = vld [vmem:[%s3343_s1 + $0x208] ss:$16 sps:$4 sm:$0xff]  }
  0x18   :  { %1250 = vmatprep.subr.bf16.mxu0 %v2273_v24  ;;  %1414 = vmatprep.subr.bf16.mxu1 %v2275_v25  ;;  %v29_v5 = vpack.c.bf16 %v22_v2, %v22_v2  ;;  %v2333_v6 = vld [vmem:[%s3343_s1 + $0x200] ss:$16 sps:$4 sm:$0xff]   ;;  %v2341_v8 = vld [vmem:[%s3343_s1 + $0x224] ss:$16 sps:$4 sm:$0xff]   ;;  %v2344_v9 = vld [vmem:[%s3343_s1 + $0x22c] ss:$16 sps:$4 sm:$0xff]  }
  0x19   :  { %v2339_v10 = vld [vmem:[%s3343_s1 + $0x220] ss:$16 sps:$4 sm:$0xff]   ;;  %v2342_v11 = vld [vmem:[%s3343_s1 + $0x228] ss:$16 sps:$4 sm:$0xff]   ;;  %v2347_v12 = vld [vmem:[%s3343_s1 + $0x244] ss:$16 sps:$4 sm:$0xff]  }
  0x1a   :  { %v2350_v13 = vld [vmem:[%s3343_s1 + $0x24c] ss:$16 sps:$4 sm:$0xff]   ;;  %v2345_v14 = vld [vmem:[%s3343_s1 + $0x240] ss:$16 sps:$4 sm:$0xff]   ;;  %v2348_v15 = vld [vmem:[%s3343_s1 + $0x248] ss:$16 sps:$4 sm:$0xff]  }
  0x1b   :  { %1251 = vmatpush1.bf16.msra.mxu0 %v2277_v26  ;;  %1415 = vmatpush1.bf16.msra.mxu1 %v2278_v27  ;;  %v2353_v16 = vld [vmem:[%s3343_s1 + $0x264] ss:$16 sps:$4 sm:$0xff]   ;;  %v2356_v17 = vld [vmem:[%s3343_s1 + $0x26c] ss:$16 sps:$4 sm:$0xff]   ;;  %v2351_v18 = vld [vmem:[%s3343_s1 + $0x260] ss:$16 sps:$4 sm:$0xff]  }
  0x1c   :  { %1252 = vmatprep.subr.bf16.mxu0 %v2279_v28  ;;  %1416 = vmatprep.subr.bf16.mxu1 %v2281_v29  ;;  %v2354_v19 = vld [vmem:[%s3343_s1 + $0x268] ss:$16 sps:$4 sm:$0xff]   ;;  %v2359_v20 = vld [vmem:[%s3343_s1 + $0x284] ss:$16 sps:$4 sm:$0xff]   ;;  %v2362_v21 = vld [vmem:[%s3343_s1 + $0x28c] ss:$16 sps:$4 sm:$0xff]  }
  0x1d   :  { %v2357_v22 = vld [vmem:[%s3343_s1 + $0x280] ss:$16 sps:$4 sm:$0xff]   ;;  %v2360_v23 = vld [vmem:[%s3343_s1 + $0x288] ss:$16 sps:$4 sm:$0xff]   ;;  %v2365_v24 = vld [vmem:[%s3343_s1 + $0x2a4] ss:$16 sps:$4 sm:$0xff]  }
  0x1e   :  { %v2368_v25 = vld [vmem:[%s3343_s1 + $0x2ac] ss:$16 sps:$4 sm:$0xff]   ;;  %v2363_v26 = vld [vmem:[%s3343_s1 + $0x2a0] ss:$16 sps:$4 sm:$0xff]   ;;  %v2366_v27 = vld [vmem:[%s3343_s1 + $0x2a8] ss:$16 sps:$4 sm:$0xff]  }
  0x1f   :  { %1253 = vmatpush1.bf16.msra.mxu0 %v2283_v30  ;;  %1417 = vmatpush1.bf16.msra.mxu1 %v2284_v31  ;;  %v2371_v28 = vld [vmem:[%s3343_s1 + $0x2c4] ss:$16 sps:$4 sm:$0xff]   ;;  %v2374_v29 = vld [vmem:[%s3343_s1 + $0x2cc] ss:$16 sps:$4 sm:$0xff]   ;;  %v2369_v31 = vld [vmem:[%s3343_s1 + $0x2c0] ss:$16 sps:$4 sm:$0xff]  }
  0x20   :  { %1254 = vmatprep.subr.bf16.mxu0 %v2285_v32  ;;  %1418 = vmatprep.subr.bf16.mxu1 %v2287_v33  ;;  %v25_v30 = vld [vmem:[%s3342_s0 + $0x18] sm:$0xff]  ;;  %v2395_v46 = vld [vmem:[%s3343_s1 + $0x344] ss:$16 sps:$4 sm:$0xff]   ;;  %v2393_v48 = vld [vmem:[%s3343_s1 + $0x340] ss:$16 sps:$4 sm:$0xff]  }
  0x21   :  { %v32_v32 = vpack.c.bf16 %v25_v30, %v25_v30  ;;  %v2372_v33 = vld [vmem:[%s3343_s1 + $0x2c8] ss:$16 sps:$4 sm:$0xff]   ;;  %v2425_v2 = vld [vmem:[%s3343_s1 + $0x3e4] ss:$16 sps:$4 sm:$0xff]  }
  0x22   :  { %v2461_v30 = vld [vmem:[%s3343_s1 + $0x4a4] ss:$16 sps:$4 sm:$0xff]  }
  0x23   :  { %1255 = vmatpush1.bf16.msra.mxu0 %v2289_v34  ;;  %1419 = vmatpush1.bf16.msra.mxu1 %v2290_v35  ;;  %v2377_v34 = vld [vmem:[%s3343_s1 + $0x2e4] ss:$16 sps:$4 sm:$0xff]   ;;  %v2380_v35 = vld [vmem:[%s3343_s1 + $0x2ec] ss:$16 sps:$4 sm:$0xff]  }
  0x24   :  { %1256 = vmatprep.subr.bf16.mxu0 %v2291_v36  ;;  %1420 = vmatprep.subr.bf16.mxu1 %v2293_v37  ;;  %v2375_v36 = vld [vmem:[%s3343_s1 + $0x2e0] ss:$16 sps:$4 sm:$0xff]   ;;  %v2378_v37 = vld [vmem:[%s3343_s1 + $0x2e8] ss:$16 sps:$4 sm:$0xff]  }
  0x27   :  { %1257 = vmatpush1.bf16.msra.mxu0 %v2295_v38  ;;  %1421 = vmatpush1.bf16.msra.mxu1 %v2296_v39  ;;  %v2383_v38 = vld [vmem:[%s3343_s1 + $0x304] ss:$16 sps:$4 sm:$0xff]   ;;  %v2386_v39 = vld [vmem:[%s3343_s1 + $0x30c] ss:$16 sps:$4 sm:$0xff]  }
  0x28   :  { %1258 = vmatprep.subr.bf16.mxu0 %v2297_v40  ;;  %1422 = vmatprep.subr.bf16.mxu1 %v2299_v41  ;;  %v2381_v40 = vld [vmem:[%s3343_s1 + $0x300] ss:$16 sps:$4 sm:$0xff]   ;;  %v2384_v41 = vld [vmem:[%s3343_s1 + $0x308] ss:$16 sps:$4 sm:$0xff]  }
  0x2b   :  { %1259 = vmatpush1.bf16.msra.mxu0 %v2301_v42  ;;  %1423 = vmatpush1.bf16.msra.mxu1 %v2302_v43  ;;  %v2389_v42 = vld [vmem:[%s3343_s1 + $0x324] ss:$16 sps:$4 sm:$0xff]   ;;  %v2392_v43 = vld [vmem:[%s3343_s1 + $0x32c] ss:$16 sps:$4 sm:$0xff]  }
  0x2c   :  { %1260 = vmatprep.subr.bf16.mxu0 %v2303_v44  ;;  %1424 = vmatprep.subr.bf16.mxu1 %v2305_v45  ;;  %v2387_v44 = vld [vmem:[%s3343_s1 + $0x320] ss:$16 sps:$4 sm:$0xff]   ;;  %v2390_v45 = vld [vmem:[%s3343_s1 + $0x328] ss:$16 sps:$4 sm:$0xff]  }
  0x2f   :  { %1261 = vmatpush1.bf16.msra.mxu0 %v2307_v47  ;;  %1425 = vmatpush1.bf16.msra.mxu1 %v2308_v49  ;;  %v2398_v47 = vld [vmem:[%s3343_s1 + $0x34c] ss:$16 sps:$4 sm:$0xff]   ;;  %v2396_v49 = vld [vmem:[%s3343_s1 + $0x348] ss:$16 sps:$4 sm:$0xff]  }
  0x30   :  { %1262 = vmatprep.subr.bf16.mxu0 %v2309_v50  ;;  %1426 = vmatprep.subr.bf16.mxu1 %v2311_v51  ;;  %v2401_v50 = vld [vmem:[%s3343_s1 + $0x364] ss:$16 sps:$4 sm:$0xff]   ;;  %v2404_v51 = vld [vmem:[%s3343_s1 + $0x36c] ss:$16 sps:$4 sm:$0xff]  }
  0x33   :  { %1263 = vmatpush1.bf16.msra.mxu0 %v2313_v52  ;;  %1427 = vmatpush1.bf16.msra.mxu1 %v2314_v53  ;;  %v2399_v52 = vld [vmem:[%s3343_s1 + $0x360] ss:$16 sps:$4 sm:$0xff]   ;;  %v2402_v53 = vld [vmem:[%s3343_s1 + $0x368] ss:$16 sps:$4 sm:$0xff]  }
  0x34   :  { %1264 = vmatprep.subr.bf16.mxu0 %v2315_v54  ;;  %1428 = vmatprep.subr.bf16.mxu1 %v2317_v55  ;;  %v2407_v54 = vld [vmem:[%s3343_s1 + $0x384] ss:$16 sps:$4 sm:$0xff]   ;;  %v2410_v55 = vld [vmem:[%s3343_s1 + $0x38c] ss:$16 sps:$4 sm:$0xff]  }
  0x37   :  { %1265 = vmatpush1.bf16.msra.mxu0 %v2319_v56  ;;  %1429 = vmatpush1.bf16.msra.mxu1 %v2320_v57  ;;  %v2405_v56 = vld [vmem:[%s3343_s1 + $0x380] ss:$16 sps:$4 sm:$0xff]   ;;  %v2408_v57 = vld [vmem:[%s3343_s1 + $0x388] ss:$16 sps:$4 sm:$0xff]  }
  0x38   :  { %1266 = vmatprep.subr.bf16.mxu0 %v2321_v58  ;;  %1430 = vmatprep.subr.bf16.mxu1 %v2323_v59  ;;  %v2413_v58 = vld [vmem:[%s3343_s1 + $0x3a4] ss:$16 sps:$4 sm:$0xff]   ;;  %v2416_v59 = vld [vmem:[%s3343_s1 + $0x3ac] ss:$16 sps:$4 sm:$0xff]  }
  0x3b   :  { %1267 = vmatpush1.bf16.msra.mxu0 %v2325_v60  ;;  %1431 = vmatpush1.bf16.msra.mxu1 %v2326_v61  ;;  %v2411_v60 = vld [vmem:[%s3343_s1 + $0x3a0] ss:$16 sps:$4 sm:$0xff]   ;;  %v2414_v61 = vld [vmem:[%s3343_s1 + $0x3a8] ss:$16 sps:$4 sm:$0xff]  }
  0x3c   :  { %1268 = vmatprep.subr.bf16.mxu0 %v2327_v62  ;;  %1432 = vmatprep.subr.bf16.mxu1 %v2329_v63  ;;  %v2419_v62 = vld [vmem:[%s3343_s1 + $0x3c4] ss:$16 sps:$4 sm:$0xff]   ;;  %v2422_v63 = vld [vmem:[%s3343_s1 + $0x3cc] ss:$16 sps:$4 sm:$0xff]  }
  0x3f   :  { %1269 = vmatpush1.bf16.msra.mxu0 %v2331_v0  ;;  %1433 = vmatpush1.bf16.msra.mxu1 %v2332_v1  ;;  %v2417_v0 = vld [vmem:[%s3343_s1 + $0x3c0] ss:$16 sps:$4 sm:$0xff]   ;;  %v2420_v1 = vld [vmem:[%s3343_s1 + $0x3c8] ss:$16 sps:$4 sm:$0xff]  }
  0x40   :  { %1279 = vmatprep.subr.bf16.mxu0 %v2335_v3  ;;  %1443 = vmatprep.subr.bf16.mxu1 %v2338_v4  ;;  %v2428_v3 = vld [vmem:[%s3343_s1 + $0x3ec] ss:$16 sps:$4 sm:$0xff]   ;;  %v2423_v4 = vld [vmem:[%s3343_s1 + $0x3e0] ss:$16 sps:$4 sm:$0xff]  }
  0x42   :  { %1271 = vmatmul.mubr.bf16.vlgmr.msra.gmra.mrb[0].mxu0 %v29_v5  ;;  %1435 = vmatmul.mubr.bf16.vlgmr.msra.gmra.mrb[0].mxu1 %v29_v5  ;;  %v2426_v5 = vld [vmem:[%s3343_s1 + $0x3e8] ss:$16 sps:$4 sm:$0xff]  }
  0x43   :  { %1280 = vmatpush1.bf16.msra.mxu0 %v2333_v6  ;;  %1444 = vmatpush1.bf16.msra.mxu1 %v2336_v7  ;;  %v2431_v6 = vld [vmem:[%s3343_s1 + $0x404] ss:$16 sps:$4 sm:$0xff]  }
  0x44   :  { %1281 = vmatprep.subr.bf16.mxu0 %v2341_v8  ;;  %1445 = vmatprep.subr.bf16.mxu1 %v2344_v9  ;;  %v24_v7 = vld [vmem:[%s3342_s0 + $0x10] sm:$0xff]  ;;  %v2434_v8 = vld [vmem:[%s3343_s1 + $0x40c] ss:$16 sps:$4 sm:$0xff]  }
  0x45   :  { %1311 = vmatprep.mubr.bf16.mxu0 %v32_v32  ;;  %1475 = vmatprep.mubr.bf16.mxu1 %v32_v32  ;;  %v2429_v9 = vld [vmem:[%s3343_s1 + $0x400] ss:$16 sps:$4 sm:$0xff]  }
  0x46   :  { %v2459_v32 = vld [vmem:[%s3343_s1 + $0x4a0] ss:$16 sps:$4 sm:$0xff]  }
  0x47   :  { %1282 = vmatpush1.bf16.msra.mxu0 %v2339_v10  ;;  %1446 = vmatpush1.bf16.msra.mxu1 %v2342_v11  ;;  %v31_v10 = vpack.c.bf16 %v24_v7, %v24_v7  ;;  %v2432_v11 = vld [vmem:[%s3343_s1 + $0x408] ss:$16 sps:$4 sm:$0xff]  }
  0x48   :  { %1283 = vmatprep.subr.bf16.mxu0 %v2347_v12  ;;  %1447 = vmatprep.subr.bf16.mxu1 %v2350_v13  ;;  %v2437_v12 = vld [vmem:[%s3343_s1 + $0x424] ss:$16 sps:$4 sm:$0xff]   ;;  %v2440_v13 = vld [vmem:[%s3343_s1 + $0x42c] ss:$16 sps:$4 sm:$0xff]  }
  0x4b   :  { %1284 = vmatpush1.bf16.msra.mxu0 %v2345_v14  ;;  %1448 = vmatpush1.bf16.msra.mxu1 %v2348_v15  ;;  %v27_v14 = vld [vmem:[%s3342_s0 + $0x28] sm:$0xff] }
  0x4c   :  { %1285 = vmatprep.subr.bf16.mxu0 %v2353_v16  ;;  %1449 = vmatprep.subr.bf16.mxu1 %v2356_v17  ;;  %v34_v15 = vpack.c.bf16 %v27_v14, %v27_v14  ;;  %v2435_v16 = vld [vmem:[%s3343_s1 + $0x420] ss:$16 sps:$4 sm:$0xff]   ;;  %v2438_v17 = vld [vmem:[%s3343_s1 + $0x428] ss:$16 sps:$4 sm:$0xff]  }
  0x4f   :  { %1286 = vmatpush1.bf16.msra.mxu0 %v2351_v18  ;;  %1450 = vmatpush1.bf16.msra.mxu1 %v2354_v19  ;;  %v2443_v18 = vld [vmem:[%s3343_s1 + $0x444] ss:$16 sps:$4 sm:$0xff]   ;;  %v2446_v19 = vld [vmem:[%s3343_s1 + $0x44c] ss:$16 sps:$4 sm:$0xff]  }
  0x50   :  { %1287 = vmatprep.subr.bf16.mxu0 %v2359_v20  ;;  %1451 = vmatprep.subr.bf16.mxu1 %v2362_v21  ;;  %v2441_v20 = vld [vmem:[%s3343_s1 + $0x440] ss:$16 sps:$4 sm:$0xff]   ;;  %v2444_v21 = vld [vmem:[%s3343_s1 + $0x448] ss:$16 sps:$4 sm:$0xff]  }
  0x53   :  { %1288 = vmatpush1.bf16.msra.mxu0 %v2357_v22  ;;  %1452 = vmatpush1.bf16.msra.mxu1 %v2360_v23  ;;  %v2449_v22 = vld [vmem:[%s3343_s1 + $0x464] ss:$16 sps:$4 sm:$0xff]   ;;  %v2452_v23 = vld [vmem:[%s3343_s1 + $0x46c] ss:$16 sps:$4 sm:$0xff]  }
  0x54   :  { %1289 = vmatprep.subr.bf16.mxu0 %v2365_v24  ;;  %1453 = vmatprep.subr.bf16.mxu1 %v2368_v25  ;;  %v2447_v24 = vld [vmem:[%s3343_s1 + $0x460] ss:$16 sps:$4 sm:$0xff]   ;;  %v2450_v25 = vld [vmem:[%s3343_s1 + $0x468] ss:$16 sps:$4 sm:$0xff]  }
  0x57   :  { %1290 = vmatpush1.bf16.msra.mxu0 %v2363_v26  ;;  %1454 = vmatpush1.bf16.msra.mxu1 %v2366_v27  ;;  %v2455_v26 = vld [vmem:[%s3343_s1 + $0x484] ss:$16 sps:$4 sm:$0xff]   ;;  %v2458_v27 = vld [vmem:[%s3343_s1 + $0x48c] ss:$16 sps:$4 sm:$0xff]  }
  0x58   :  { %1291 = vmatprep.subr.bf16.mxu0 %v2371_v28  ;;  %1455 = vmatprep.subr.bf16.mxu1 %v2374_v29  ;;  %v2453_v28 = vld [vmem:[%s3343_s1 + $0x480] ss:$16 sps:$4 sm:$0xff]   ;;  %v2456_v29 = vld [vmem:[%s3343_s1 + $0x488] ss:$16 sps:$4 sm:$0xff]  }
  0x5b   :  { %1292 = vmatpush1.bf16.msra.mxu0 %v2369_v31  ;;  %1456 = vmatpush1.bf16.msra.mxu1 %v2372_v33  ;;  %v2464_v31 = vld [vmem:[%s3343_s1 + $0x4ac] ss:$16 sps:$4 sm:$0xff]   ;;  %v2462_v33 = vld [vmem:[%s3343_s1 + $0x4a8] ss:$16 sps:$4 sm:$0xff]  }
  0x5c   :  { %1293 = vmatprep.subr.bf16.mxu0 %v2377_v34  ;;  %1457 = vmatprep.subr.bf16.mxu1 %v2380_v35  ;;  %v2467_v34 = vld [vmem:[%s3343_s1 + $0x4c4] ss:$16 sps:$4 sm:$0xff]   ;;  %v2470_v35 = vld [vmem:[%s3343_s1 + $0x4cc] ss:$16 sps:$4 sm:$0xff]  }
  0x5f   :  { %1294 = vmatpush1.bf16.msra.mxu0 %v2375_v36  ;;  %1458 = vmatpush1.bf16.msra.mxu1 %v2378_v37  ;;  %v2465_v36 = vld [vmem:[%s3343_s1 + $0x4c0] ss:$16 sps:$4 sm:$0xff]   ;;  %v2468_v37 = vld [vmem:[%s3343_s1 + $0x4c8] ss:$16 sps:$4 sm:$0xff]  }
  0x60   :  { %1295 = vmatprep.subr.bf16.mxu0 %v2383_v38  ;;  %1459 = vmatprep.subr.bf16.mxu1 %v2386_v39  ;;  %v2473_v38 = vld [vmem:[%s3343_s1 + $0x4e4] ss:$16 sps:$4 sm:$0xff]   ;;  %v2476_v39 = vld [vmem:[%s3343_s1 + $0x4ec] ss:$16 sps:$4 sm:$0xff]  }
  0x63   :  { %1296 = vmatpush1.bf16.msra.mxu0 %v2381_v40  ;;  %1460 = vmatpush1.bf16.msra.mxu1 %v2384_v41  ;;  %v2471_v40 = vld [vmem:[%s3343_s1 + $0x4e0] ss:$16 sps:$4 sm:$0xff]   ;;  %v2474_v41 = vld [vmem:[%s3343_s1 + $0x4e8] ss:$16 sps:$4 sm:$0xff]  }
  0x64   :  { %1297 = vmatprep.subr.bf16.mxu0 %v2389_v42  ;;  %1461 = vmatprep.subr.bf16.mxu1 %v2392_v43  ;;  %v2479_v42 = vld [vmem:[%s3343_s1 + $0x504] ss:$16 sps:$4 sm:$0xff]   ;;  %v2482_v43 = vld [vmem:[%s3343_s1 + $0x50c] ss:$16 sps:$4 sm:$0xff]  }
  0x67   :  { %1298 = vmatpush1.bf16.msra.mxu0 %v2387_v44  ;;  %1462 = vmatpush1.bf16.msra.mxu1 %v2390_v45  ;;  %v2477_v44 = vld [vmem:[%s3343_s1 + $0x500] ss:$16 sps:$4 sm:$0xff]   ;;  %v2480_v45 = vld [vmem:[%s3343_s1 + $0x508] ss:$16 sps:$4 sm:$0xff]  }
  0x68   :  { %1299 = vmatprep.subr.bf16.mxu0 %v2395_v46  ;;  %1463 = vmatprep.subr.bf16.mxu1 %v2398_v47  ;;  %v2485_v46 = vld [vmem:[%s3343_s1 + $0x524] ss:$16 sps:$4 sm:$0xff]   ;;  %v2488_v47 = vld [vmem:[%s3343_s1 + $0x52c] ss:$16 sps:$4 sm:$0xff]  }
  0x6b   :  { %1300 = vmatpush1.bf16.msra.mxu0 %v2393_v48  ;;  %1464 = vmatpush1.bf16.msra.mxu1 %v2396_v49 }
  0x6c   :  { %1301 = vmatprep.subr.bf16.mxu0 %v2401_v50  ;;  %1465 = vmatprep.subr.bf16.mxu1 %v2404_v51 }
  0x6f   :  { %1302 = vmatpush1.bf16.msra.mxu0 %v2399_v52  ;;  %1466 = vmatpush1.bf16.msra.mxu1 %v2402_v53 }
  0x70   :  { %1303 = vmatprep.subr.bf16.mxu0 %v2407_v54  ;;  %1467 = vmatprep.subr.bf16.mxu1 %v2410_v55 }
  0x73   :  { %1304 = vmatpush1.bf16.msra.mxu0 %v2405_v56  ;;  %1468 = vmatpush1.bf16.msra.mxu1 %v2408_v57 }
  0x74   :  { %1305 = vmatprep.subr.bf16.mxu0 %v2413_v58  ;;  %1469 = vmatprep.subr.bf16.mxu1 %v2416_v59 }
  0x77   :  { %1306 = vmatpush1.bf16.msra.mxu0 %v2411_v60  ;;  %1470 = vmatpush1.bf16.msra.mxu1 %v2414_v61 }
  0x78   :  { %1307 = vmatprep.subr.bf16.mxu0 %v2419_v62  ;;  %1471 = vmatprep.subr.bf16.mxu1 %v2422_v63 }
  0x7b   :  { %1308 = vmatpush1.bf16.msra.mxu0 %v2417_v0  ;;  %1472 = vmatpush1.bf16.msra.mxu1 %v2420_v1 }
  0x7c   :  { %1309 = vmatprep.subr.bf16.mxu0 %v2425_v2  ;;  %1473 = vmatprep.subr.bf16.mxu1 %v2428_v3 }
  0x7f   :  { %1310 = vmatpush1.bf16.msra.mxu0 %v2423_v4  ;;  %1474 = vmatpush1.bf16.msra.mxu1 %v2426_v5 }
  0x80   :  { %1320 = vmatprep.subr.bf16.mxu0 %v2431_v6  ;;  %1484 = vmatprep.subr.bf16.mxu1 %v2434_v8 }
  0x82   :  { %1312 = vmatmul.mubr.bf16.vlgmr.msra.gmra.mrb[0].mxu0 %v31_v10  ;;  %1476 = vmatmul.mubr.bf16.vlgmr.msra.gmra.mrb[0].mxu1 %v31_v10 }
  0x83   :  { %1321 = vmatpush1.bf16.msra.mxu0 %v2429_v9  ;;  %1485 = vmatpush1.bf16.msra.mxu1 %v2432_v11 }
  0x84   :  { %1322 = vmatprep.subr.bf16.mxu0 %v2437_v12  ;;  %1486 = vmatprep.subr.bf16.mxu1 %v2440_v13 }
  0x85   :  { %1352 = vmatprep.mubr.bf16.mxu0 %v34_v15  ;;  %1516 = vmatprep.mubr.bf16.mxu1 %v34_v15 }
  0x87   :  { %1323 = vmatpush1.bf16.msra.mxu0 %v2435_v16  ;;  %1487 = vmatpush1.bf16.msra.mxu1 %v2438_v17 }
  0x88   :  { %1324 = vmatprep.subr.bf16.mxu0 %v2443_v18  ;;  %1488 = vmatprep.subr.bf16.mxu1 %v2446_v19 }
  0x8b   :  { %1325 = vmatpush1.bf16.msra.mxu0 %v2441_v20  ;;  %1489 = vmatpush1.bf16.msra.mxu1 %v2444_v21 }
  0x8c   :  { %1326 = vmatprep.subr.bf16.mxu0 %v2449_v22  ;;  %1490 = vmatprep.subr.bf16.mxu1 %v2452_v23 }
  0x8f   :  { %1327 = vmatpush1.bf16.msra.mxu0 %v2447_v24  ;;  %1491 = vmatpush1.bf16.msra.mxu1 %v2450_v25 }
  0x90   :  { %1328 = vmatprep.subr.bf16.mxu0 %v2455_v26  ;;  %1492 = vmatprep.subr.bf16.mxu1 %v2458_v27 }
  0x93   :  { %1329 = vmatpush1.bf16.msra.mxu0 %v2453_v28  ;;  %1493 = vmatpush1.bf16.msra.mxu1 %v2456_v29 }
  0x94   :  { %1330 = vmatprep.subr.bf16.mxu0 %v2461_v30  ;;  %1494 = vmatprep.subr.bf16.mxu1 %v2464_v31 }
  0x97   :  { %1331 = vmatpush1.bf16.msra.mxu0 %v2459_v32  ;;  %1495 = vmatpush1.bf16.msra.mxu1 %v2462_v33 }
  0x98   :  { %1332 = vmatprep.subr.bf16.mxu0 %v2467_v34  ;;  %1496 = vmatprep.subr.bf16.mxu1 %v2470_v35 }
  0x9b   :  { %1333 = vmatpush1.bf16.msra.mxu0 %v2465_v36  ;;  %1497 = vmatpush1.bf16.msra.mxu1 %v2468_v37 }
  0x9c   :  { %1334 = vmatprep.subr.bf16.mxu0 %v2473_v38  ;;  %1498 = vmatprep.subr.bf16.mxu1 %v2476_v39 }
  0x9f   :  { %1335 = vmatpush1.bf16.msra.mxu0 %v2471_v40  ;;  %1499 = vmatpush1.bf16.msra.mxu1 %v2474_v41 }
  0xa0   :  { %1336 = vmatprep.subr.bf16.mxu0 %v2479_v42  ;;  %1500 = vmatprep.subr.bf16.mxu1 %v2482_v43 }
  0xa1   :  { %10 = vsyncpa [#allocation3], 0  ;;  %v2483_v48 = vld [vmem:[%s3343_s1 + $0x520] ss:$16 sps:$4 sm:$0xff]   ;;  %v2486_v49 = vld [vmem:[%s3343_s1 + $0x528] ss:$16 sps:$4 sm:$0xff]  }
  0xa2   :  { %v2491_v50 = vld [vmem:[%s3343_s1 + $0x544] ss:$16 sps:$4 sm:$0xff]   ;;  %v2494_v51 = vld [vmem:[%s3343_s1 + $0x54c] ss:$16 sps:$4 sm:$0xff]   ;;  %v2489_v52 = vld [vmem:[%s3343_s1 + $0x540] ss:$16 sps:$4 sm:$0xff]  }
  0xa3   :  { %1337 = vmatpush1.bf16.msra.mxu0 %v2477_v44  ;;  %1501 = vmatpush1.bf16.msra.mxu1 %v2480_v45  ;;  %v2492_v53 = vld [vmem:[%s3343_s1 + $0x548] ss:$16 sps:$4 sm:$0xff]   ;;  %v2497_v54 = vld [vmem:[%s3343_s1 + $0x564] ss:$16 sps:$4 sm:$0xff]   ;;  %v2500_v55 = vld [vmem:[%s3343_s1 + $0x56c] ss:$16 sps:$4 sm:$0xff]  }
  0xa4   :  { %1338 = vmatprep.subr.bf16.mxu0 %v2485_v46  ;;  %1502 = vmatprep.subr.bf16.mxu1 %v2488_v47  ;;  %v2495_v56 = vld [vmem:[%s3343_s1 + $0x560] ss:$16 sps:$4 sm:$0xff]   ;;  %v2498_v57 = vld [vmem:[%s3343_s1 + $0x568] ss:$16 sps:$4 sm:$0xff]   ;;  %v2503_v58 = vld [vmem:[%s3343_s1 + $0x584] ss:$16 sps:$4 sm:$0xff]  }
  0xa5   :  { %v2506_v59 = vld [vmem:[%s3343_s1 + $0x58c] ss:$16 sps:$4 sm:$0xff]   ;;  %v2501_v60 = vld [vmem:[%s3343_s1 + $0x580] ss:$16 sps:$4 sm:$0xff]   ;;  %v2504_v61 = vld [vmem:[%s3343_s1 + $0x588] ss:$16 sps:$4 sm:$0xff]  }
  0xa6   :  { %v2509_v62 = vld [vmem:[%s3343_s1 + $0x5a4] ss:$16 sps:$4 sm:$0xff]   ;;  %v2512_v63 = vld [vmem:[%s3343_s1 + $0x5ac] ss:$16 sps:$4 sm:$0xff]   ;;  %v2507_v0 = vld [vmem:[%s3343_s1 + $0x5a0] ss:$16 sps:$4 sm:$0xff]  }
  0xa7   :  { %1339 = vmatpush1.bf16.msra.mxu0 %v2483_v48  ;;  %1503 = vmatpush1.bf16.msra.mxu1 %v2486_v49  ;;  %v2510_v1 = vld [vmem:[%s3343_s1 + $0x5a8] ss:$16 sps:$4 sm:$0xff]   ;;  %v2515_v2 = vld [vmem:[%s3343_s1 + $0x5c4] ss:$16 sps:$4 sm:$0xff]   ;;  %v2518_v3 = vld [vmem:[%s3343_s1 + $0x5cc] ss:$16 sps:$4 sm:$0xff]  }
  0xa8   :  { %1340 = vmatprep.subr.bf16.mxu0 %v2491_v50  ;;  %1504 = vmatprep.subr.bf16.mxu1 %v2494_v51  ;;  %v2513_v4 = vld [vmem:[%s3343_s1 + $0x5c0] ss:$16 sps:$4 sm:$0xff]   ;;  %v2516_v5 = vld [vmem:[%s3343_s1 + $0x5c8] ss:$16 sps:$4 sm:$0xff]   ;;  %v2521_v6 = vld [vmem:[%s3343_s1 + $0x5e4] ss:$16 sps:$4 sm:$0xff]   ;;  %v234_v51 = vlaneseq }
  0xa9   :  { %v2524_v7 = vld [vmem:[%s3343_s1 + $0x5ec] ss:$16 sps:$4 sm:$0xff]   ;;  %v2519_v8 = vld [vmem:[%s3343_s1 + $0x5e0] ss:$16 sps:$4 sm:$0xff]   ;;  %v2522_v9 = vld [vmem:[%s3343_s1 + $0x5e8] ss:$16 sps:$4 sm:$0xff]  }
  0xaa   :  { %v26_v10 = vld [vmem:[%s3342_s0 + $0x20] sm:$0xff]  ;;  %v2530_v12 = vld [vmem:[%s3343_s1 + $0x60c] ss:$16 sps:$4 sm:$0xff]   ;;  %v2528_v15 = vld [vmem:[%s3343_s1 + $0x608] ss:$16 sps:$4 sm:$0xff]   ;;  %v2587_v18 = vmov 0  }
  0xab   :  { %1341 = vmatpush1.bf16.msra.mxu0 %v2489_v52  ;;  %1505 = vmatpush1.bf16.msra.mxu1 %v2492_v53  ;;  %v2527_v11 = vld [vmem:[%s3343_s1 + $0x604] ss:$16 sps:$4 sm:$0xff]   ;;  %v33_v13 = vpack.c.bf16 %v26_v10, %v26_v10  ;;  %v2525_v14 = vld [vmem:[%s3343_s1 + $0x600] ss:$16 sps:$4 sm:$0xff]   ;;  %vm1234_vm0 = vcmask 130048   ;;  %v2535_v23 = vld [vmem:[%s3345_s3 + $0x48] sm:$0xff]  }
  0xac   :  { %1342 = vmatprep.subr.bf16.mxu0 %v2497_v54  ;;  %1506 = vmatprep.subr.bf16.mxu1 %v2500_v55  ;;  %v2531_v16 = vld [vmem:[%s3345_s3 + $0x40] sm:$0xff]   ;;  %v28_v19 = vld [vmem:[%s3342_s0 + $0x30] sm:$0xff]  ;;  %v2536_v24 = vld [vmem:[%s3345_s3 + $0xc8] sm:$0xff]   ;;  %v235_v52 = vshrl.u32 %v234_v51, 7  ;;  %s2588_s0 = smov [#allocation2]  }
  0xad   :  { %v2532_v17 = vld [vmem:[%s3345_s3 + $0xc0] sm:$0xff]   ;;  %v35_v20 = vpack.c.bf16 %v28_v19, %v28_v19  ;;  %v2537_v25 = vld [vmem:[%s3345_s3 + $0x8] sm:$0xff]   ;;  %v2539_v27 = vld [vmem:[%s3345_s3 + $0x50] sm:$0xff]   ;;  %s1924_s10 = sshll.u32 %s2588_s0, 4  ;;  %s1925_s10 = int_to_ptr.vmem [resolvable:$true] %s1924_s10 }
  0xae   :  { %v2533_v21 = vld [vmem:[%s3345_s3] sm:$0xff]   ;;  %v2538_v26 = vld [vmem:[%s3345_s3 + $0x88] sm:$0xff]   ;;  %v2540_v28 = vld [vmem:[%s3345_s3 + $0xd0] sm:$0xff]   ;;  %v236_v53 = vsub.s32 0, %v235_v52  ;;  %v244_v54 = vsub.s32 2, %v235_v52  ;;  %s2563_s11 = scalar_lea.vmem %s1925_s10, 128  ;;  %p2568_p1 = scmp.lt.s32.totalorder %s1925_s10, %s1925_s10 }
  0xaf   :  { %1343 = vmatpush1.bf16.msra.mxu0 %v2495_v56  ;;  %1507 = vmatpush1.bf16.msra.mxu1 %v2498_v57  ;;  %v2534_v22 = vld [vmem:[%s3345_s3 + $0x80] sm:$0xff]   ;;  %v2541_v29 = vld [vmem:[%s3345_s3 + $0x10] sm:$0xff]   ;;  %v2543_v31 = vld [vmem:[%s3345_s3 + $0x58] sm:$0xff]   ;;  %v240_v56 = vsub.s32 1, %v235_v52  ;;  %v248_v57 = vsub.s32 3, %v235_v52  ;;  %p2564_p0 = scmp.ne.s32.totalorder %s1925_s10, %s2563_s11  ;;  %p2569_p2 = scmp.lt.s32.totalorder %s2563_s11, %s2563_s11 }
  0xb0   :  { %1344 = vmatprep.subr.bf16.mxu0 %v2503_v58  ;;  %1508 = vmatprep.subr.bf16.mxu1 %v2506_v59  ;;  %v2542_v30 = vld [vmem:[%s3345_s3 + $0x90] sm:$0xff]   ;;  %v2544_v32 = vld [vmem:[%s3345_s3 + $0xd8] sm:$0xff]   ;;  %v2547_v35 = vld [vmem:[%s3345_s3 + $0x60] sm:$0xff]  }
  0xb1   :  { %v2545_v33 = vld [vmem:[%s3345_s3 + $0x18] sm:$0xff]   ;;  %v2548_v36 = vld [vmem:[%s3345_s3 + $0xe0] sm:$0xff]   ;;  %v2551_v39 = vld [vmem:[%s3345_s3 + $0x68] sm:$0xff]   ;;  %p2570_p3 = por %p2569_p2, %p2568_p1 }
  0xb2   :  { %v2546_v34 = vld [vmem:[%s3345_s3 + $0x98] sm:$0xff]   ;;  %v2549_v37 = vld [vmem:[%s3345_s3 + $0x20] sm:$0xff]   ;;  %v2552_v40 = vld [vmem:[%s3345_s3 + $0xe8] sm:$0xff]  }
  0xb3   :  { %1345 = vmatpush1.bf16.msra.mxu0 %v2501_v60  ;;  %1509 = vmatpush1.bf16.msra.mxu1 %v2504_v61  ;;  %v2550_v38 = vld [vmem:[%s3345_s3 + $0xa0] sm:$0xff]   ;;  %v2553_v41 = vld [vmem:[%s3345_s3 + $0x28] sm:$0xff]   ;;  %v2555_v43 = vld [vmem:[%s3345_s3 + $0x70] sm:$0xff]   ;;  %p2571_p4 = pnand %p2570_p3, %p2564_p0 }
  0xb4   :  { %1346 = vmatprep.subr.bf16.mxu0 %v2509_v62  ;;  %1510 = vmatprep.subr.bf16.mxu1 %v2512_v63  ;;  %v2554_v42 = vld [vmem:[%s3345_s3 + $0xa8] sm:$0xff]   ;;  %v2556_v44 = vld [vmem:[%s3345_s3 + $0xf0] sm:$0xff]   ;;  %v2559_v47 = vld [vmem:[%s3345_s3 + $0x78] sm:$0xff]  }
  0xb5   :  { %v2557_v45 = vld [vmem:[%s3345_s3 + $0x30] sm:$0xff]   ;;  %v2560_v48 = vld [vmem:[%s3345_s3 + $0xf8] sm:$0xff]   ;;  %v232_v55 = vld [vmem:[%s3344_s2] sm:$0xf] }
  0xb6   :  { %v2558_v46 = vld [vmem:[%s3345_s3 + $0xb0] sm:$0xff]   ;;  %v2561_v49 = vld [vmem:[%s3345_s3 + $0x38] sm:$0xff]   ;;  %v237_v58 = vrot.slane %v232_v55, %v236_v53  ;;  %v245_v59 = vrot.slane %v232_v55, %v244_v54  ;;  %v241_v60 = vrot.slane %v232_v55, %v240_v56  ;;  %v249_v61 = vrot.slane %v232_v55, %v248_v57 }
  0xb7   :  { %1347 = vmatpush1.bf16.msra.mxu0 %v2507_v0  ;;  %1511 = vmatpush1.bf16.msra.mxu1 %v2510_v1  ;;  %v2562_v50 = vld [vmem:[%s3345_s3 + $0xb8] sm:$0xff]  }
  0xb8   :  { %1348 = vmatprep.subr.bf16.mxu0 %v2515_v2  ;;  %1512 = vmatprep.subr.bf16.mxu1 %v2518_v3 }
  0xbb   :  { %1349 = vmatpush1.bf16.msra.mxu0 %v2513_v4  ;;  %1513 = vmatpush1.bf16.msra.mxu1 %v2516_v5 }
  0xbc   :  { %1350 = vmatprep.subr.bf16.mxu0 %v2521_v6  ;;  %1514 = vmatprep.subr.bf16.mxu1 %v2524_v7 }
  0xbf   :  { %1351 = vmatpush1.bf16.msra.mxu0 %v2519_v8  ;;  %1515 = vmatpush1.bf16.msra.mxu1 %v2522_v9 }
  0xc0   :  { %1361 = vmatprep.subr.bf16.mxu0 %v2527_v11  ;;  %1525 = vmatprep.subr.bf16.mxu1 %v2530_v12 }
  0xc2   :  { %1353 = vmatmul.mubr.bf16.vlgmr.msra.gmra.mrb[0].mxu0 %v33_v13  ;;  %1517 = vmatmul.mubr.bf16.vlgmr.msra.gmra.mrb[0].mxu1 %v33_v13 }
  0xc3   :  { %1362 = vmatpush1.bf16.msra.mxu0 %v2525_v14  ;;  %1526 = vmatpush1.bf16.msra.mxu1 %v2528_v15 }
  0xc4   :  { %1393 = vmatprep.mubr.bf16.mxu0 %v2587_v18  ;;  %1557 = vmatprep.mubr.bf16.mxu1 %v2587_v18 }
  0xc5   :  { %2163 = vmatprep.subr.bf16.mxu0 %v2531_v16  ;;  %2185 = vmatprep.subr.bf16.mxu1 %v2532_v17 }
  0xce   :  { %2128 = vmatmul.mubr.msk.bf16.vlgmr.msra.gmra.mrb[0].mxu0 %vm1234_vm0, %v35_v20  ;;  %2129 = vmatmul.mubr.msk.bf16.vlgmr.msra.gmra.mrb[0].mxu1 %vm1234_vm0, %v35_v20  ;;  %v2130_v20 = vld [vmem:[%s3346_s4] ss:$0 sm:$0xff] }
  0xcf   :  { %2164 = vmatpush3.bf16.msra.mxu0 %v2533_v21  ;;  %2186 = vmatpush3.bf16.msra.mxu1 %v2534_v22 }
  0xd0   :  { %2165 = vmatprep.subr.bf16.mxu0 %v2535_v23  ;;  %2187 = vmatprep.subr.bf16.mxu1 %v2536_v24 }
  0xd3   :  { %2166 = vmatpush3.bf16.msra.mxu0 %v2537_v25  ;;  %2188 = vmatpush3.bf16.msra.mxu1 %v2538_v26 }
  0xd4   :  { %2167 = vmatprep.subr.bf16.mxu0 %v2539_v27  ;;  %2189 = vmatprep.subr.bf16.mxu1 %v2540_v28 }
  0xd7   :  { %2168 = vmatpush3.bf16.msra.mxu0 %v2541_v29  ;;  %2190 = vmatpush3.bf16.msra.mxu1 %v2542_v30 }
  0xd8   :  { %2169 = vmatprep.subr.bf16.mxu0 %v2543_v31  ;;  %2191 = vmatprep.subr.bf16.mxu1 %v2544_v32 }
  0xdb   :  { %2170 = vmatpush3.bf16.msra.mxu0 %v2545_v33  ;;  %2192 = vmatpush3.bf16.msra.mxu1 %v2546_v34 }
  0xdc   :  { %2171 = vmatprep.subr.bf16.mxu0 %v2547_v35  ;;  %2193 = vmatprep.subr.bf16.mxu1 %v2548_v36 }
  0xdf   :  { %2172 = vmatpush3.bf16.msra.mxu0 %v2549_v37  ;;  %2194 = vmatpush3.bf16.msra.mxu1 %v2550_v38 }
  0xe0   :  { %2173 = vmatprep.subr.bf16.mxu0 %v2551_v39  ;;  %2195 = vmatprep.subr.bf16.mxu1 %v2552_v40 }
  0xe3   :  { %2174 = vmatpush3.bf16.msra.mxu0 %v2553_v41  ;;  %2196 = vmatpush3.bf16.msra.mxu1 %v2554_v42 }
  0xe4   :  { %2175 = vmatprep.subr.bf16.mxu0 %v2555_v43  ;;  %2197 = vmatprep.subr.bf16.mxu1 %v2556_v44 }
  0xe7   :  { %2176 = vmatpush3.bf16.msra.mxu0 %v2557_v45  ;;  %2198 = vmatpush3.bf16.msra.mxu1 %v2558_v46 }
  0xe8   :  { %2177 = vmatprep.subr.bf16.mxu0 %v2559_v47  ;;  %2199 = vmatprep.subr.bf16.mxu1 %v2560_v48 }
  0xeb   :  { %2178 = vmatpush3.bf16.msra.mxu0 %v2561_v49  ;;  %2200 = vmatpush3.bf16.msra.mxu1 %v2562_v50 }
 0x1a1   :  { %v1395_v62 = vpop.f32.mrb[0].mxu0  ;;  %v1559_v63 = vpop.f32.mrb[0].mxu1 }
 0x1a2   :  { %v2207_v0 = vadd.f32 %v1395_v62, %v237_v58  ;;  %v2209_v1 = vadd.f32 %v1559_v63, %v245_v59  ;;  %v1397_v2 = vpop.f32.mrb[1].mxu0  ;;  %v1561_v3 = vpop.f32.mrb[1].mxu1 }
 0x1a3   :  { %v2208_v4 = vadd.f32 %v1397_v2, %v241_v60  ;;  %v2210_v5 = vadd.f32 %v1561_v3, %v249_v61  ;;  %v1399_v6 = vpop.f32.mrb[2].mxu0  ;;  %v1563_v7 = vpop.f32.mrb[2].mxu1 }
 0x1a4   :  { %v1566_v8 = vmax.f32 %v2207_v0, 0.0  ;;  %v1568_v9 = vmax.f32 %v2209_v1, 0.0  ;;  %v1400_v10 = vpop.f32.mrb[3].mxu0  ;;  %v1564_v11 = vpop.f32.mrb[3].mxu1 }
 0x1a5   :  { %v1567_v12 = vmax.f32 %v2208_v4, 0.0  ;;  %v1569_v13 = vmax.f32 %v2210_v5, 0.0 }
 0x1a6   :  { %v1570_v16 = vpack.c.bf16 %v1566_v8, %v1566_v8  ;;  %v1572_v17 = vpack.c.bf16 %v1568_v9, %v1568_v9 }
 0x1a7   :  { %v1571_v14 = vpack.c.bf16 %v1567_v12, %v1567_v12  ;;  %v1573_v15 = vpack.c.bf16 %v1569_v13, %v1569_v13 }
 0x1a9   :  { %1869 = vmatprep.mubr.bf16.mxu0 %v1571_v14  ;;  %1909 = vmatprep.mubr.bf16.mxu1 %v1573_v15 }
 0x1aa   :  { %1870 = vmatmul.mubr.bf16.vlgmr.msra.gmra.mrb[4].mxu0 %v1570_v16  ;;  %1910 = vmatmul.mubr.bf16.vlgmr.msra.gmra.mrb[4].mxu1 %v1572_v17 }
 0x27d   :  { %v2179_v18 = vpop.f32.mrb[4].mxu0  ;;  %v2201_v19 = vpop.f32.mrb[4].mxu1 }
 0x27e   :  { %v2180_v21 = vpop.f32.mrb[5].mxu0  ;;  %v2202_v22 = vpop.f32.mrb[5].mxu1 }
 0x27f   :  { %v2181_v23 = vadd.f32 %v2180_v21, %v2179_v18  ;;  %v2203_v24 = vadd.f32 %v2202_v22, %v2201_v19  ;;  %v2182_v25 = vpop.f32.mrb[6].mxu0  ;;  %v2204_v26 = vpop.f32.mrb[6].mxu1 }
 0x280   :  { %v2183_v27 = vpop.f32.mrb[7].mxu0  ;;  %v2205_v28 = vpop.f32.mrb[7].mxu1 }
 0x281   :  { %v1872_v29 = vadd.f32 %v2181_v23, %v2130_v20 }
 0x283   :  { %v1912_v30 = vadd.f32 %v2203_v24, %v1872_v29 }
 0x285   :  { %1917 = vst [vmem:[#allocation2] sm:$0xff] %v1912_v30 }
 0x286   :  { %2574 = shalt.err (!%p2571_p4)
}
 0x287   :  { %s2575_s13 = scalar_lea.hbm %s3347_s5, 128 }
 0x288   :  { %p2576_p5 = scmp.ne.s32.totalorder %s3347_s5, %s2575_s13  ;;  %p2579_p6 = scmp.lt.u32.totalorder %s2575_s13, %s3347_s5 }
 0x28a   :  { %p2581_p7 = pnand %p2579_p6, %p2576_p5 }
 0x28c   :  { %2584 = shalt.err (!%p2581_p7)
}
 0x28d   :  { %1927 = dma.vmem_to_hbm [thread:$0]  %s1925_s10, 128, %s3347_s5, [#allocation3]  }
 0x28e   :  { %2585 = dma.done.wait [#allocation3], 128  }
 0x28f   :  { %2586 = vsyncadd [#allocation3], 4294967168 }
 0x290   :  { %1931 = vsyncpa [#allocation3], 1 }

</bundles_post_ra>
